<compile_context>
chip_gen: v5e
topology: v5e:2x2
jax: 0.10.0
libtpu: 0.0.40
codegen_flags: <defaults>
</compile_context>

<pallas_src>
import numpy as np
import jax
import jax.numpy as jnp
from jax import lax
from jax.experimental import pallas as pl
from jax.experimental.pallas import tpu as pltpu

HIDDEN_DIM_MULTIPLIER = 10

# Module defaults (match the PyTorch __init__ defaults).
IN_NODE_CH = 5
HID_NODE_CH = 2
OUT_NODE_CH = 1
IN_EDGE_CH = 1
HID_EDGE_CH = 2
N_LAYER = 3

# (d_in, d_hidden, d_out) of each 3-layer MLP.
NODE_EMB_DIMS = (IN_NODE_CH, IN_NODE_CH * HIDDEN_DIM_MULTIPLIER, HID_NODE_CH)
EDGE_EMB_DIMS = (IN_EDGE_CH, IN_EDGE_CH * HIDDEN_DIM_MULTIPLIER, HID_EDGE_CH)
HID_EMB_DIMS = (HID_NODE_CH * HID_EDGE_CH,
                HID_NODE_CH * HID_EDGE_CH * HIDDEN_DIM_MULTIPLIER,
                HID_NODE_CH)
RO_DIMS = (HID_NODE_CH + IN_NODE_CH,
           (HID_NODE_CH + IN_NODE_CH) * HIDDEN_DIM_MULTIPLIER,
           OUT_NODE_CH)


def _mlp_rows(dims):
    d_in, d_h, _ = dims
    return d_in + 2 * d_h + 3      # W1 rows + W2 rows + W3 rows + 3 bias rows


PACK_WIDTH = max(NODE_EMB_DIMS[1], EDGE_EMB_DIMS[1], HID_EMB_DIMS[1], RO_DIMS[1])
GW_ROWS = N_LAYER * HID_EDGE_CH * HID_NODE_CH
GB_ROWS = N_LAYER * HID_EDGE_CH
TOTAL_ROWS = (sum(_mlp_rows(d) for d in
                  (NODE_EMB_DIMS, EDGE_EMB_DIMS, HID_EMB_DIMS, RO_DIMS))
              + GW_ROWS + GB_ROWS)


# ----------------------------------------------------------------------------
# In-kernel helpers.
# ----------------------------------------------------------------------------
def _mlp3(x, p, last_relu):
    """3-layer Linear/ReLU stack; weights stored as [in, out], biases as [1, out]."""
    w1, b1, w2, b2, w3, b3 = p
    h = jnp.maximum(jnp.dot(x, w1, preferred_element_type=jnp.float32) + b1, 0.0)
    h = jnp.maximum(jnp.dot(h, w2, preferred_element_type=jnp.float32) + b2, 0.0)
    h = jnp.dot(h, w3, preferred_element_type=jnp.float32) + b3
    return jnp.maximum(h, 0.0) if last_relu else h


def _unpack_mlp(params, row, dims):
    """Static slices out of the packed parameter slab."""
    d_in, d_h, d_out = dims
    w1 = params[row:row + d_in, :d_h]; row += d_in
    w2 = params[row:row + d_h, :d_h]; row += d_h
    w3 = params[row:row + d_h, :d_out]; row += d_h
    b1 = params[row:row + 1, :d_h]; row += 1
    b2 = params[row:row + 1, :d_h]; row += 1
    b3 = params[row:row + 1, :d_out]; row += 1
    return (w1, b1, w2, b2, w3, b3), row


def wgnn_kernel(in_x_ref, ew_ref, s_src_ref, s_dst_t_ref, params_ref, out_ref):
    in_x = in_x_ref[...]                                   # [N, IN_NODE_CH] f32
    n = in_x.shape[0]

    # Single load of the packed parameter slab, all slices are static & hoisted.
    params = params_ref[...]                               # [TOTAL_ROWS, PACK_WIDTH]
    node_emb, r = _unpack_mlp(params, 0, NODE_EMB_DIMS)
    edge_emb, r = _unpack_mlp(params, r, EDGE_EMB_DIMS)
    hid_emb, r = _unpack_mlp(params, r, HID_EMB_DIMS)
    ro_emb, r = _unpack_mlp(params, r, RO_DIMS)
    gw_row = r
    gb_row = gw_row + GW_ROWS

    # Per-layer fused GCN weights / biases, unpacked ONCE before the layer loop.
    w_cats, b_cats = [], []
    for l in range(N_LAYER):
        w_cats.append(jnp.concatenate(
            [params[gw_row + (l * HID_EDGE_CH + c) * HID_NODE_CH:
                    gw_row + (l * HID_EDGE_CH + c + 1) * HID_NODE_CH, :HID_NODE_CH]
             for c in range(HID_EDGE_CH)], axis=1))        # [H, C*H]
        b_cats.append(jnp.concatenate(
            [params[gb_row + l * HID_EDGE_CH + c:
                    gb_row + l * HID_EDGE_CH + c + 1, :HID_NODE_CH]
             for c in range(HID_EDGE_CH)], axis=1))        # [1, C*H]

    # Input node / edge embeddings (both Sequentials end with ReLU).
    x = _mlp3(in_x, node_emb, True)                        # [N, HID_NODE_CH]
    ew = _mlp3(ew_ref[...], edge_emb, True)                # [E, HID_EDGE_CH]

    # One-hot scatter matrices arrive as bf16 (exact 0/1); do weighted math in f32.
    s_src = s_src_ref[...].astype(jnp.float32)             # [E, N]
    s_dst_t = s_dst_t_ref[...].astype(jnp.float32)         # [N, E]

    # Fused weighted-adjacency build: one MXU contraction for all edge channels.
    scaled_src = jnp.concatenate(
        [ew[:, c:c + 1] * s_src for c in range(HID_EDGE_CH)], axis=1)  # [E, C*N]
    a_both = jnp.dot(s_dst_t, scaled_src,
                     preferred_element_type=jnp.float32)   # [N, C*N], A_c[i,j]=sum w_c(j->i)

    # GCN normalization with analytic self loops (no eye / a_hat materialization).
    a_norm_blocks = []
    dd = []                                                # dis^2 per channel, [N, 1]
    for c in range(HID_EDGE_CH):
        a_c = a_both[:, c * n:(c + 1) * n]
        deg = jnp.sum(a_c, axis=1, keepdims=True) + 1.0    # self loop weight 1.0, deg >= 1
        dis = lax.rsqrt(deg)                               # D^{-1/2}, EUP
        a_norm_blocks.append(dis * a_c * dis.reshape(1, n))
        dd.append(dis * dis)
    a_norm = jnp.concatenate(a_norm_blocks, axis=1)        # [N, C*N] = [A0n | A1n]

    for l in range(N_LAYER):
        xw = jnp.dot(x, w_cats[l], preferred_element_type=jnp.float32)  # [N, C*H]
        xw_c = [xw[:, c * HID_NODE_CH:(c + 1) * HID_NODE_CH]
                for c in range(HID_EDGE_CH)]
        zeros = jnp.zeros_like(xw_c[0])

        # Block-diagonal [C*N, C*H] so one matmul yields the channel-concatenated output.
        bd_rows = []
        for c in range(HID_EDGE_CH):
            bd_rows.append(jnp.concatenate(
                [xw_c[c] if cc == c else zeros for cc in range(HID_EDGE_CH)], axis=1))
        bd = jnp.concatenate(bd_rows, axis=0)              # [C*N, C*H]

        h = jnp.dot(a_norm, bd, preferred_element_type=jnp.float32)   # [A0n@xw0 | A1n@xw1]
        self_term = jnp.concatenate(
            [dd[c] * xw_c[c] for c in range(HID_EDGE_CH)], axis=1)    # D^{-1} X W_c term
        h = jnp.maximum(h + self_term + b_cats[l], 0.0)    # per-conv .relu(), concatenated
        x = _mlp3(h, hid_emb, True)                        # [N, HID_NODE_CH]

    y = _mlp3(jnp.concatenate([x, in_x], axis=1), ro_emb, False)
    out_ref[...] = jax.nn.sigmoid(y)


# ----------------------------------------------------------------------------
# Parameter construction (deterministic, synthetic) + host-side packing.
# ----------------------------------------------------------------------------
def _linear(key, fan_in, fan_out):
    k1, k2 = jax.random.split(key)
    w = jax.random.normal(k1, (fan_in, fan_out), jnp.float32) / np.sqrt(fan_in)
    b = 0.01 * jax.random.normal(k2, (1, fan_out), jnp.float32)
    return w, b


def _mlp3_params(key, dims):
    d_in, d_h, d_out = dims
    k1, k2, k3 = jax.random.split(key, 3)
    w1, b1 = _linear(k1, d_in, d_h)
    w2, b2 = _linear(k2, d_h, d_h)
    w3, b3 = _linear(k3, d_h, d_out)
    return [w1, b1, w2, b2, w3, b3]


def init_params(key):
    keys = jax.random.split(key, 5)
    p = {}
    p["in_node_emb"] = _mlp3_params(keys[0], NODE_EMB_DIMS)
    p["in_edge_emb"] = _mlp3_params(keys[1], EDGE_EMB_DIMS)
    p["hidden_node_emb"] = _mlp3_params(keys[2], HID_EMB_DIMS)
    p["read_out"] = _mlp3_params(keys[3], RO_DIMS)
    kg1, kg2 = jax.random.split(keys[4])
    p["gw"] = jax.random.normal(
        kg1, (N_LAYER, HID_EDGE_CH, HID_NODE_CH, HID_NODE_CH), jnp.float32
    ) / np.sqrt(HID_NODE_CH)
    p["gb"] = 0.01 * jax.random.normal(
        kg2, (N_LAYER, HID_EDGE_CH, 1, HID_NODE_CH), jnp.float32)
    return p


def _pack_mlp(buf, row, p, dims):
    d_in, d_h, d_out = dims
    w1, b1, w2, b2, w3, b3 = [np.asarray(t) for t in p]
    buf[row:row + d_in, :d_h] = w1; row += d_in
    buf[row:row + d_h, :d_h] = w2; row += d_h
    buf[row:row + d_h, :d_out] = w3; row += d_h
    buf[row, :d_h] = b1[0]; row += 1
    buf[row, :d_h] = b2[0]; row += 1
    buf[row, :d_out] = b3[0]; row += 1
    return row


def pack_params(p):
    """Pack all MLP + GCN parameters into one [TOTAL_ROWS, PACK_WIDTH] f32 slab."""
    buf = np.zeros((TOTAL_ROWS, PACK_WIDTH), np.float32)
    row = 0
    row = _pack_mlp(buf, row, p["in_node_emb"], NODE_EMB_DIMS)
    row = _pack_mlp(buf, row, p["in_edge_emb"], EDGE_EMB_DIMS)
    row = _pack_mlp(buf, row, p["hidden_node_emb"], HID_EMB_DIMS)
    row = _pack_mlp(buf, row, p["read_out"], RO_DIMS)
    gw = np.asarray(p["gw"])
    gb = np.asarray(p["gb"])
    for l in range(N_LAYER):
        for c in range(HID_EDGE_CH):
            buf[row:row + HID_NODE_CH, :HID_NODE_CH] = gw[l, c]
            row += HID_NODE_CH
    for l in range(N_LAYER):
        for c in range(HID_EDGE_CH):
            buf[row, :HID_NODE_CH] = gb[l, c, 0]
            row += 1
    assert row == TOTAL_ROWS
    return jnp.asarray(buf)


# ----------------------------------------------------------------------------
# Pallas wrapper.
# ----------------------------------------------------------------------------
def wgnn_forward(in_x, edge_index, edge_weight, params):
    n = in_x.shape[0]
    src = edge_index[0]
    dst = edge_index[1]
    # Glue: one-hot scatter matrices in bf16 (0/1 exact) -> half the DMA bytes.
    s_src = jax.nn.one_hot(src, n, dtype=jnp.bfloat16)        # [E, N]
    s_dst_t = jax.nn.one_hot(dst, n, dtype=jnp.bfloat16).T    # [N, E]
    packed = pack_params(params)                              # one slab, one DMA

    return pl.pallas_call(
        wgnn_kernel,
        out_shape=jax.ShapeDtypeStruct((n, OUT_NODE_CH), jnp.float32),
        in_specs=[pl.BlockSpec(memory_space=pltpu.MemorySpace.VMEM)] * 5,
        out_specs=pl.BlockSpec(memory_space=pltpu.MemorySpace.VMEM),
    )(in_x, edge_weight, s_src, s_dst_t, packed)


# ----------------------------------------------------------------------------
# Pure-JAX reference (same math, independent implementation) for validation.
# ----------------------------------------------------------------------------
def wgnn_reference(in_x, edge_index, edge_weight, p):
    def mlp3(x, pp, last_relu):
        w1, b1, w2, b2, w3, b3 = pp
        h = jnp.maximum(x @ w1 + b1, 0.0)
        h = jnp.maximum(h @ w2 + b2, 0.0)
        h = h @ w3 + b3
        return jnp.maximum(h, 0.0) if last_relu else h

    n = in_x.shape[0]
    x = mlp3(in_x, p["in_node_emb"], True)
    ew = mlp3(edge_weight, p["in_edge_emb"], True)
    src, dst = edge_index[0], edge_index[1]
    a_norms = []
    for c in range(HID_EDGE_CH):
        a = jnp.zeros((n, n), jnp.float32).at[dst, src].add(ew[:, c])
        a_hat = a + jnp.eye(n, dtype=jnp.float32)
        deg = a_hat.sum(axis=1, keepdims=True)
        dis = jnp.where(deg > 0.0, 1.0 / jnp.sqrt(jnp.maximum(deg, 1e-30)), 0.0)
        a_norms.append(dis * a_hat * dis.T)
    for l in range(N_LAYER):
        outs = []
        for c in range(HID_EDGE_CH):
            h = a_norms[c] @ (x @ p["gw"][l, c]) + p["gb"][l, c]
            outs.append(jnp.maximum(h, 0.0))
        x = mlp3(jnp.concatenate(outs, axis=1), p["hidden_node_emb"], True)
    y = mlp3(jnp.concatenate([x, in_x], axis=1), p["read_out"], False)
    return jax.nn.sigmoid(y)


if __name__ == "__main__":
    key = jax.random.PRNGKey(0)
    k_param, k_x, k_w = jax.random.split(key, 3)

    N = 8    # nodes
    E = 16   # edges (no self loops by construction)

    params = init_params(k_param)
    in_x = jax.random.normal(k_x, (N, IN_NODE_CH), jnp.float32)
    edge_weight = jax.random.uniform(k_w, (E, IN_EDGE_CH), jnp.float32)

    e = np.arange(E)
    src = (e % N).astype(np.int32)
    dst = ((3 * e + 1) % N).astype(np.int32)   # never equals src -> no self loops
    edge_index = jnp.asarray(np.stack([src, dst], axis=0))

    y = wgnn_forward(in_x, edge_index, edge_weight, params)
    y = jax.block_until_ready(y)

    y_ref = jax.block_until_ready(wgnn_reference(in_x, edge_index, edge_weight, params))

    assert y.shape == (N, OUT_NODE_CH)
    np.testing.assert_allclose(np.asarray(y), np.asarray(y_ref), rtol=1e-4, atol=1e-4)
    print("KERNEL_OK")
</pallas_src>

<mosaic_0001>
module attributes {stable_mosaic.version = 11 : i64} {
  func.func @wgnn_kernel(%arg0: memref<8x5xf32, #tpu.memory_space<vmem>>, %arg1: memref<16x1xf32, #tpu.memory_space<vmem>>, %arg2: memref<16x8xbf16, #tpu.memory_space<vmem>>, %arg3: memref<8x16xbf16, #tpu.memory_space<vmem>>, %arg4: memref<387x70xf32, #tpu.memory_space<vmem>>, %arg5: memref<8x1xf32, #tpu.memory_space<vmem>>) attributes {dimension_semantics = [], scalar_prefetch = 0 : i64, scratch_operands = 0 : i64, tpu.core_type = #tpu.core_type<tc>} {
    %c0 = arith.constant 0 : index
    %c0_0 = arith.constant 0 : index
    %0 = vector.load %arg0[%c0, %c0_0] : memref<8x5xf32, #tpu.memory_space<vmem>>, vector<8x5xf32>
    %c0_1 = arith.constant 0 : index
    %c0_2 = arith.constant 0 : index
    %1 = vector.load %arg4[%c0_1, %c0_2] : memref<387x70xf32, #tpu.memory_space<vmem>>, vector<387x70xf32>
    %2 = vector.extract_strided_slice %1 {offsets = [0, 0], sizes = [5, 50], strides = [1, 1]} : vector<387x70xf32> to vector<5x50xf32>
    %3 = vector.extract_strided_slice %1 {offsets = [5, 0], sizes = [50, 50], strides = [1, 1]} : vector<387x70xf32> to vector<50x50xf32>
    %4 = vector.extract_strided_slice %1 {offsets = [55, 0], sizes = [50, 2], strides = [1, 1]} : vector<387x70xf32> to vector<50x2xf32>
    %5 = vector.extract_strided_slice %1 {offsets = [105, 0], sizes = [1, 50], strides = [1, 1]} : vector<387x70xf32> to vector<1x50xf32>
    %6 = vector.extract_strided_slice %1 {offsets = [106, 0], sizes = [1, 50], strides = [1, 1]} : vector<387x70xf32> to vector<1x50xf32>
    %7 = vector.extract_strided_slice %1 {offsets = [107, 0], sizes = [1, 2], strides = [1, 1]} : vector<387x70xf32> to vector<1x2xf32>
    %8 = vector.extract_strided_slice %1 {offsets = [108, 0], sizes = [1, 10], strides = [1, 1]} : vector<387x70xf32> to vector<1x10xf32>
    %9 = vector.extract_strided_slice %1 {offsets = [109, 0], sizes = [10, 10], strides = [1, 1]} : vector<387x70xf32> to vector<10x10xf32>
    %10 = vector.extract_strided_slice %1 {offsets = [119, 0], sizes = [10, 2], strides = [1, 1]} : vector<387x70xf32> to vector<10x2xf32>
    %11 = vector.extract_strided_slice %1 {offsets = [129, 0], sizes = [1, 10], strides = [1, 1]} : vector<387x70xf32> to vector<1x10xf32>
    %12 = vector.extract_strided_slice %1 {offsets = [130, 0], sizes = [1, 10], strides = [1, 1]} : vector<387x70xf32> to vector<1x10xf32>
    %13 = vector.extract_strided_slice %1 {offsets = [131, 0], sizes = [1, 2], strides = [1, 1]} : vector<387x70xf32> to vector<1x2xf32>
    %14 = vector.extract_strided_slice %1 {offsets = [132, 0], sizes = [4, 40], strides = [1, 1]} : vector<387x70xf32> to vector<4x40xf32>
    %15 = vector.extract_strided_slice %1 {offsets = [136, 0], sizes = [40, 40], strides = [1, 1]} : vector<387x70xf32> to vector<40x40xf32>
    %16 = vector.extract_strided_slice %1 {offsets = [176, 0], sizes = [40, 2], strides = [1, 1]} : vector<387x70xf32> to vector<40x2xf32>
    %17 = vector.extract_strided_slice %1 {offsets = [216, 0], sizes = [1, 40], strides = [1, 1]} : vector<387x70xf32> to vector<1x40xf32>
    %18 = vector.extract_strided_slice %1 {offsets = [217, 0], sizes = [1, 40], strides = [1, 1]} : vector<387x70xf32> to vector<1x40xf32>
    %19 = vector.extract_strided_slice %1 {offsets = [218, 0], sizes = [1, 2], strides = [1, 1]} : vector<387x70xf32> to vector<1x2xf32>
    %20 = vector.extract_strided_slice %1 {offsets = [219, 0], sizes = [7, 70], strides = [1, 1]} : vector<387x70xf32> to vector<7x70xf32>
    %21 = vector.extract_strided_slice %1 {offsets = [226, 0], sizes = [70, 70], strides = [1, 1]} : vector<387x70xf32> to vector<70x70xf32>
    %22 = vector.extract_strided_slice %1 {offsets = [296, 0], sizes = [70, 1], strides = [1, 1]} : vector<387x70xf32> to vector<70x1xf32>
    %23 = vector.extract_strided_slice %1 {offsets = [366, 0], sizes = [1, 70], strides = [1, 1]} : vector<387x70xf32> to vector<1x70xf32>
    %24 = vector.extract_strided_slice %1 {offsets = [367, 0], sizes = [1, 70], strides = [1, 1]} : vector<387x70xf32> to vector<1x70xf32>
    %25 = vector.extract_strided_slice %1 {offsets = [368, 0], sizes = [1, 1], strides = [1, 1]} : vector<387x70xf32> to vector<1x1xf32>
    %26 = vector.extract_strided_slice %1 {offsets = [369, 0], sizes = [2, 2], strides = [1, 1]} : vector<387x70xf32> to vector<2x2xf32>
    %27 = vector.extract_strided_slice %1 {offsets = [371, 0], sizes = [2, 2], strides = [1, 1]} : vector<387x70xf32> to vector<2x2xf32>
    %28 = tpu.concatenate %26, %27 in 1 : vector<2x2xf32>, vector<2x2xf32> -> vector<2x4xf32>
    %29 = vector.extract_strided_slice %1 {offsets = [381, 0], sizes = [1, 2], strides = [1, 1]} : vector<387x70xf32> to vector<1x2xf32>
    %30 = vector.extract_strided_slice %1 {offsets = [382, 0], sizes = [1, 2], strides = [1, 1]} : vector<387x70xf32> to vector<1x2xf32>
    %31 = tpu.concatenate %29, %30 in 1 : vector<1x2xf32>, vector<1x2xf32> -> vector<1x4xf32>
    %32 = vector.extract_strided_slice %1 {offsets = [373, 0], sizes = [2, 2], strides = [1, 1]} : vector<387x70xf32> to vector<2x2xf32>
    %33 = vector.extract_strided_slice %1 {offsets = [375, 0], sizes = [2, 2], strides = [1, 1]} : vector<387x70xf32> to vector<2x2xf32>
    %34 = tpu.concatenate %32, %33 in 1 : vector<2x2xf32>, vector<2x2xf32> -> vector<2x4xf32>
    %35 = vector.extract_strided_slice %1 {offsets = [383, 0], sizes = [1, 2], strides = [1, 1]} : vector<387x70xf32> to vector<1x2xf32>
    %36 = vector.extract_strided_slice %1 {offsets = [384, 0], sizes = [1, 2], strides = [1, 1]} : vector<387x70xf32> to vector<1x2xf32>
    %37 = tpu.concatenate %35, %36 in 1 : vector<1x2xf32>, vector<1x2xf32> -> vector<1x4xf32>
    %38 = vector.extract_strided_slice %1 {offsets = [377, 0], sizes = [2, 2], strides = [1, 1]} : vector<387x70xf32> to vector<2x2xf32>
    %39 = vector.extract_strided_slice %1 {offsets = [379, 0], sizes = [2, 2], strides = [1, 1]} : vector<387x70xf32> to vector<2x2xf32>
    %40 = tpu.concatenate %38, %39 in 1 : vector<2x2xf32>, vector<2x2xf32> -> vector<2x4xf32>
    %41 = vector.extract_strided_slice %1 {offsets = [385, 0], sizes = [1, 2], strides = [1, 1]} : vector<387x70xf32> to vector<1x2xf32>
    %42 = vector.extract_strided_slice %1 {offsets = [386, 0], sizes = [1, 2], strides = [1, 1]} : vector<387x70xf32> to vector<1x2xf32>
    %43 = tpu.concatenate %41, %42 in 1 : vector<1x2xf32>, vector<1x2xf32> -> vector<1x4xf32>
    %cst = arith.constant dense<0.000000e+00> : vector<8x50xf32>
    %44 = tpu.matmul %0, %2, %cst {dimension_numbers = #tpu.dot_dimension_numbers<[1], [0], [0], [1], [0, 0, 1, 1], [], []>} : vector<8x5xf32>, vector<5x50xf32>, vector<8x50xf32> -> vector<8x50xf32>
    %45 = vector.broadcast %5 : vector<1x50xf32> to vector<8x50xf32>
    %46 = arith.addf %44, %45 : vector<8x50xf32>
    %cst_3 = arith.constant 0.000000e+00 : f32
    %47 = vector.broadcast %cst_3 : f32 to vector<8x50xf32>
    %48 = arith.maximumf %46, %47 : vector<8x50xf32>
    %cst_4 = arith.constant dense<0.000000e+00> : vector<8x50xf32>
    %49 = tpu.matmul %48, %3, %cst_4 {dimension_numbers = #tpu.dot_dimension_numbers<[1], [0], [0], [1], [0, 0, 1, 1], [], []>} : vector<8x50xf32>, vector<50x50xf32>, vector<8x50xf32> -> vector<8x50xf32>
    %50 = vector.broadcast %6 : vector<1x50xf32> to vector<8x50xf32>
    %51 = arith.addf %49, %50 : vector<8x50xf32>
    %cst_5 = arith.constant 0.000000e+00 : f32
    %52 = vector.broadcast %cst_5 : f32 to vector<8x50xf32>
    %53 = arith.maximumf %51, %52 : vector<8x50xf32>
    %cst_6 = arith.constant dense<0.000000e+00> : vector<8x2xf32>
    %54 = tpu.matmul %53, %4, %cst_6 {dimension_numbers = #tpu.dot_dimension_numbers<[1], [0], [0], [1], [0, 0, 1, 1], [], []>} : vector<8x50xf32>, vector<50x2xf32>, vector<8x2xf32> -> vector<8x2xf32>
    %55 = vector.broadcast %7 : vector<1x2xf32> to vector<8x2xf32>
    %56 = arith.addf %54, %55 : vector<8x2xf32>
    %cst_7 = arith.constant 0.000000e+00 : f32
    %57 = vector.broadcast %cst_7 : f32 to vector<8x2xf32>
    %58 = arith.maximumf %56, %57 : vector<8x2xf32>
    %c0_8 = arith.constant 0 : index
    %c0_9 = arith.constant 0 : index
    %59 = vector.load %arg1[%c0_8, %c0_9] : memref<16x1xf32, #tpu.memory_space<vmem>>, vector<16x1xf32>
    %cst_10 = arith.constant dense<0.000000e+00> : vector<16x10xf32>
    %60 = tpu.matmul %59, %8, %cst_10 {dimension_numbers = #tpu.dot_dimension_numbers<[1], [0], [0], [1], [0, 0, 1, 1], [], []>} : vector<16x1xf32>, vector<1x10xf32>, vector<16x10xf32> -> vector<16x10xf32>
    %61 = vector.broadcast %11 : vector<1x10xf32> to vector<16x10xf32>
    %62 = arith.addf %60, %61 : vector<16x10xf32>
    %cst_11 = arith.constant 0.000000e+00 : f32
    %63 = vector.broadcast %cst_11 : f32 to vector<16x10xf32>
    %64 = arith.maximumf %62, %63 : vector<16x10xf32>
    %cst_12 = arith.constant dense<0.000000e+00> : vector<16x10xf32>
    %65 = tpu.matmul %64, %9, %cst_12 {dimension_numbers = #tpu.dot_dimension_numbers<[1], [0], [0], [1], [0, 0, 1, 1], [], []>} : vector<16x10xf32>, vector<10x10xf32>, vector<16x10xf32> -> vector<16x10xf32>
    %66 = vector.broadcast %12 : vector<1x10xf32> to vector<16x10xf32>
    %67 = arith.addf %65, %66 : vector<16x10xf32>
    %cst_13 = arith.constant 0.000000e+00 : f32
    %68 = vector.broadcast %cst_13 : f32 to vector<16x10xf32>
    %69 = arith.maximumf %67, %68 : vector<16x10xf32>
    %cst_14 = arith.constant dense<0.000000e+00> : vector<16x2xf32>
    %70 = tpu.matmul %69, %10, %cst_14 {dimension_numbers = #tpu.dot_dimension_numbers<[1], [0], [0], [1], [0, 0, 1, 1], [], []>} : vector<16x10xf32>, vector<10x2xf32>, vector<16x2xf32> -> vector<16x2xf32>
    %71 = vector.broadcast %13 : vector<1x2xf32> to vector<16x2xf32>
    %72 = arith.addf %70, %71 : vector<16x2xf32>
    %cst_15 = arith.constant 0.000000e+00 : f32
    %73 = vector.broadcast %cst_15 : f32 to vector<16x2xf32>
    %74 = arith.maximumf %72, %73 : vector<16x2xf32>
    %c0_16 = arith.constant 0 : index
    %c0_17 = arith.constant 0 : index
    %75 = vector.load %arg2[%c0_16, %c0_17] : memref<16x8xbf16, #tpu.memory_space<vmem>>, vector<16x8xbf16>
    %76 = arith.extf %75 : vector<16x8xbf16> to vector<16x8xf32>
    %c0_18 = arith.constant 0 : index
    %c0_19 = arith.constant 0 : index
    %77 = vector.load %arg3[%c0_18, %c0_19] : memref<8x16xbf16, #tpu.memory_space<vmem>>, vector<8x16xbf16>
    %78 = arith.extf %77 : vector<8x16xbf16> to vector<8x16xf32>
    %79 = vector.extract_strided_slice %74 {offsets = [0, 0], sizes = [16, 1], strides = [1, 1]} : vector<16x2xf32> to vector<16x1xf32>
    %80 = vector.broadcast %79 : vector<16x1xf32> to vector<16x8xf32>
    %81 = arith.mulf %80, %76 : vector<16x8xf32>
    %82 = vector.extract_strided_slice %74 {offsets = [0, 1], sizes = [16, 1], strides = [1, 1]} : vector<16x2xf32> to vector<16x1xf32>
    %83 = vector.broadcast %82 : vector<16x1xf32> to vector<16x8xf32>
    %84 = arith.mulf %83, %76 : vector<16x8xf32>
    %85 = tpu.concatenate %81, %84 in 1 : vector<16x8xf32>, vector<16x8xf32> -> vector<16x16xf32>
    %cst_20 = arith.constant dense<0.000000e+00> : vector<8x16xf32>
    %86 = tpu.matmul %78, %85, %cst_20 {dimension_numbers = #tpu.dot_dimension_numbers<[1], [0], [0], [1], [0, 0, 1, 1], [], []>} : vector<8x16xf32>, vector<16x16xf32>, vector<8x16xf32> -> vector<8x16xf32>
    %87 = vector.extract_strided_slice %86 {offsets = [0, 0], sizes = [8, 8], strides = [1, 1]} : vector<8x16xf32> to vector<8x8xf32>
    %cst_21 = arith.constant dense<0.000000e+00> : vector<8xf32>
    %88 = vector.multi_reduction <add>, %87, %cst_21 [1] : vector<8x8xf32> to vector<8xf32>
    %89 = vector.shape_cast %88 : vector<8xf32> to vector<8x1xf32>
    %cst_22 = arith.constant 1.000000e+00 : f32
    %90 = vector.broadcast %cst_22 : f32 to vector<8x1xf32>
    %91 = arith.addf %89, %90 : vector<8x1xf32>
    %92 = math.rsqrt %91 : vector<8x1xf32>
    %93 = vector.broadcast %92 : vector<8x1xf32> to vector<8x8xf32>
    %94 = arith.mulf %93, %87 : vector<8x8xf32>
    %95 = vector.shape_cast %92 : vector<8x1xf32> to vector<1x8xf32>
    %96 = vector.broadcast %95 : vector<1x8xf32> to vector<8x8xf32>
    %97 = arith.mulf %94, %96 : vector<8x8xf32>
    %98 = arith.mulf %92, %92 : vector<8x1xf32>
    %99 = vector.extract_strided_slice %86 {offsets = [0, 8], sizes = [8, 8], strides = [1, 1]} : vector<8x16xf32> to vector<8x8xf32>
    %cst_23 = arith.constant dense<0.000000e+00> : vector<8xf32>
    %100 = vector.multi_reduction <add>, %99, %cst_23 [1] : vector<8x8xf32> to vector<8xf32>
    %101 = vector.shape_cast %100 : vector<8xf32> to vector<8x1xf32>
    %cst_24 = arith.constant 1.000000e+00 : f32
    %102 = vector.broadcast %cst_24 : f32 to vector<8x1xf32>
    %103 = arith.addf %101, %102 : vector<8x1xf32>
    %104 = math.rsqrt %103 : vector<8x1xf32>
    %105 = vector.broadcast %104 : vector<8x1xf32> to vector<8x8xf32>
    %106 = arith.mulf %105, %99 : vector<8x8xf32>
    %107 = vector.shape_cast %104 : vector<8x1xf32> to vector<1x8xf32>
    %108 = vector.broadcast %107 : vector<1x8xf32> to vector<8x8xf32>
    %109 = arith.mulf %106, %108 : vector<8x8xf32>
    %110 = arith.mulf %104, %104 : vector<8x1xf32>
    %111 = tpu.concatenate %97, %109 in 1 : vector<8x8xf32>, vector<8x8xf32> -> vector<8x16xf32>
    %cst_25 = arith.constant dense<0.000000e+00> : vector<8x4xf32>
    %112 = tpu.matmul %58, %28, %cst_25 {dimension_numbers = #tpu.dot_dimension_numbers<[1], [0], [0], [1], [0, 0, 1, 1], [], []>} : vector<8x2xf32>, vector<2x4xf32>, vector<8x4xf32> -> vector<8x4xf32>
    %113 = vector.extract_strided_slice %112 {offsets = [0, 0], sizes = [8, 2], strides = [1, 1]} : vector<8x4xf32> to vector<8x2xf32>
    %114 = vector.extract_strided_slice %112 {offsets = [0, 2], sizes = [8, 2], strides = [1, 1]} : vector<8x4xf32> to vector<8x2xf32>
    %cst_26 = arith.constant 0.000000e+00 : f32
    %115 = vector.broadcast %cst_26 : f32 to vector<8x2xf32>
    %116 = tpu.concatenate %113, %115 in 1 : vector<8x2xf32>, vector<8x2xf32> -> vector<8x4xf32>
    %117 = tpu.concatenate %115, %114 in 1 : vector<8x2xf32>, vector<8x2xf32> -> vector<8x4xf32>
    %118 = tpu.concatenate %116, %117 in 0 : vector<8x4xf32>, vector<8x4xf32> -> vector<16x4xf32>
    %cst_27 = arith.constant dense<0.000000e+00> : vector<8x4xf32>
    %119 = tpu.matmul %111, %118, %cst_27 {dimension_numbers = #tpu.dot_dimension_numbers<[1], [0], [0], [1], [0, 0, 1, 1], [], []>} : vector<8x16xf32>, vector<16x4xf32>, vector<8x4xf32> -> vector<8x4xf32>
    %120 = vector.broadcast %98 : vector<8x1xf32> to vector<8x2xf32>
    %121 = arith.mulf %120, %113 : vector<8x2xf32>
    %122 = vector.broadcast %110 : vector<8x1xf32> to vector<8x2xf32>
    %123 = arith.mulf %122, %114 : vector<8x2xf32>
    %124 = tpu.concatenate %121, %123 in 1 : vector<8x2xf32>, vector<8x2xf32> -> vector<8x4xf32>
    %125 = arith.addf %119, %124 : vector<8x4xf32>
    %126 = vector.broadcast %31 : vector<1x4xf32> to vector<8x4xf32>
    %127 = arith.addf %125, %126 : vector<8x4xf32>
    %cst_28 = arith.constant 0.000000e+00 : f32
    %128 = vector.broadcast %cst_28 : f32 to vector<8x4xf32>
    %129 = arith.maximumf %127, %128 : vector<8x4xf32>
    %cst_29 = arith.constant dense<0.000000e+00> : vector<8x40xf32>
    %130 = tpu.matmul %129, %14, %cst_29 {dimension_numbers = #tpu.dot_dimension_numbers<[1], [0], [0], [1], [0, 0, 1, 1], [], []>} : vector<8x4xf32>, vector<4x40xf32>, vector<8x40xf32> -> vector<8x40xf32>
    %131 = vector.broadcast %17 : vector<1x40xf32> to vector<8x40xf32>
    %132 = arith.addf %130, %131 : vector<8x40xf32>
    %cst_30 = arith.constant 0.000000e+00 : f32
    %133 = vector.broadcast %cst_30 : f32 to vector<8x40xf32>
    %134 = arith.maximumf %132, %133 : vector<8x40xf32>
    %cst_31 = arith.constant dense<0.000000e+00> : vector<8x40xf32>
    %135 = tpu.matmul %134, %15, %cst_31 {dimension_numbers = #tpu.dot_dimension_numbers<[1], [0], [0], [1], [0, 0, 1, 1], [], []>} : vector<8x40xf32>, vector<40x40xf32>, vector<8x40xf32> -> vector<8x40xf32>
    %136 = vector.broadcast %18 : vector<1x40xf32> to vector<8x40xf32>
    %137 = arith.addf %135, %136 : vector<8x40xf32>
    %cst_32 = arith.constant 0.000000e+00 : f32
    %138 = vector.broadcast %cst_32 : f32 to vector<8x40xf32>
    %139 = arith.maximumf %137, %138 : vector<8x40xf32>
    %cst_33 = arith.constant dense<0.000000e+00> : vector<8x2xf32>
    %140 = tpu.matmul %139, %16, %cst_33 {dimension_numbers = #tpu.dot_dimension_numbers<[1], [0], [0], [1], [0, 0, 1, 1], [], []>} : vector<8x40xf32>, vector<40x2xf32>, vector<8x2xf32> -> vector<8x2xf32>
    %141 = vector.broadcast %19 : vector<1x2xf32> to vector<8x2xf32>
    %142 = arith.addf %140, %141 : vector<8x2xf32>
    %cst_34 = arith.constant 0.000000e+00 : f32
    %143 = vector.broadcast %cst_34 : f32 to vector<8x2xf32>
    %144 = arith.maximumf %142, %143 : vector<8x2xf32>
    %cst_35 = arith.constant dense<0.000000e+00> : vector<8x4xf32>
    %145 = tpu.matmul %144, %34, %cst_35 {dimension_numbers = #tpu.dot_dimension_numbers<[1], [0], [0], [1], [0, 0, 1, 1], [], []>} : vector<8x2xf32>, vector<2x4xf32>, vector<8x4xf32> -> vector<8x4xf32>
    %146 = vector.extract_strided_slice %145 {offsets = [0, 0], sizes = [8, 2], strides = [1, 1]} : vector<8x4xf32> to vector<8x2xf32>
    %147 = vector.extract_strided_slice %145 {offsets = [0, 2], sizes = [8, 2], strides = [1, 1]} : vector<8x4xf32> to vector<8x2xf32>
    %cst_36 = arith.constant 0.000000e+00 : f32
    %148 = vector.broadcast %cst_36 : f32 to vector<8x2xf32>
    %149 = tpu.concatenate %146, %148 in 1 : vector<8x2xf32>, vector<8x2xf32> -> vector<8x4xf32>
    %150 = tpu.concatenate %148, %147 in 1 : vector<8x2xf32>, vector<8x2xf32> -> vector<8x4xf32>
    %151 = tpu.concatenate %149, %150 in 0 : vector<8x4xf32>, vector<8x4xf32> -> vector<16x4xf32>
    %cst_37 = arith.constant dense<0.000000e+00> : vector<8x4xf32>
    %152 = tpu.matmul %111, %151, %cst_37 {dimension_numbers = #tpu.dot_dimension_numbers<[1], [0], [0], [1], [0, 0, 1, 1], [], []>} : vector<8x16xf32>, vector<16x4xf32>, vector<8x4xf32> -> vector<8x4xf32>
    %153 = vector.broadcast %98 : vector<8x1xf32> to vector<8x2xf32>
    %154 = arith.mulf %153, %146 : vector<8x2xf32>
    %155 = vector.broadcast %110 : vector<8x1xf32> to vector<8x2xf32>
    %156 = arith.mulf %155, %147 : vector<8x2xf32>
    %157 = tpu.concatenate %154, %156 in 1 : vector<8x2xf32>, vector<8x2xf32> -> vector<8x4xf32>
    %158 = arith.addf %152, %157 : vector<8x4xf32>
    %159 = vector.broadcast %37 : vector<1x4xf32> to vector<8x4xf32>
    %160 = arith.addf %158, %159 : vector<8x4xf32>
    %cst_38 = arith.constant 0.000000e+00 : f32
    %161 = vector.broadcast %cst_38 : f32 to vector<8x4xf32>
    %162 = arith.maximumf %160, %161 : vector<8x4xf32>
    %cst_39 = arith.constant dense<0.000000e+00> : vector<8x40xf32>
    %163 = tpu.matmul %162, %14, %cst_39 {dimension_numbers = #tpu.dot_dimension_numbers<[1], [0], [0], [1], [0, 0, 1, 1], [], []>} : vector<8x4xf32>, vector<4x40xf32>, vector<8x40xf32> -> vector<8x40xf32>
    %164 = vector.broadcast %17 : vector<1x40xf32> to vector<8x40xf32>
    %165 = arith.addf %163, %164 : vector<8x40xf32>
    %cst_40 = arith.constant 0.000000e+00 : f32
    %166 = vector.broadcast %cst_40 : f32 to vector<8x40xf32>
    %167 = arith.maximumf %165, %166 : vector<8x40xf32>
    %cst_41 = arith.constant dense<0.000000e+00> : vector<8x40xf32>
    %168 = tpu.matmul %167, %15, %cst_41 {dimension_numbers = #tpu.dot_dimension_numbers<[1], [0], [0], [1], [0, 0, 1, 1], [], []>} : vector<8x40xf32>, vector<40x40xf32>, vector<8x40xf32> -> vector<8x40xf32>
    %169 = vector.broadcast %18 : vector<1x40xf32> to vector<8x40xf32>
    %170 = arith.addf %168, %169 : vector<8x40xf32>
    %cst_42 = arith.constant 0.000000e+00 : f32
    %171 = vector.broadcast %cst_42 : f32 to vector<8x40xf32>
    %172 = arith.maximumf %170, %171 : vector<8x40xf32>
    %cst_43 = arith.constant dense<0.000000e+00> : vector<8x2xf32>
    %173 = tpu.matmul %172, %16, %cst_43 {dimension_numbers = #tpu.dot_dimension_numbers<[1], [0], [0], [1], [0, 0, 1, 1], [], []>} : vector<8x40xf32>, vector<40x2xf32>, vector<8x2xf32> -> vector<8x2xf32>
    %174 = vector.broadcast %19 : vector<1x2xf32> to vector<8x2xf32>
    %175 = arith.addf %173, %174 : vector<8x2xf32>
    %cst_44 = arith.constant 0.000000e+00 : f32
    %176 = vector.broadcast %cst_44 : f32 to vector<8x2xf32>
    %177 = arith.maximumf %175, %176 : vector<8x2xf32>
    %cst_45 = arith.constant dense<0.000000e+00> : vector<8x4xf32>
    %178 = tpu.matmul %177, %40, %cst_45 {dimension_numbers = #tpu.dot_dimension_numbers<[1], [0], [0], [1], [0, 0, 1, 1], [], []>} : vector<8x2xf32>, vector<2x4xf32>, vector<8x4xf32> -> vector<8x4xf32>
    %179 = vector.extract_strided_slice %178 {offsets = [0, 0], sizes = [8, 2], strides = [1, 1]} : vector<8x4xf32> to vector<8x2xf32>
    %180 = vector.extract_strided_slice %178 {offsets = [0, 2], sizes = [8, 2], strides = [1, 1]} : vector<8x4xf32> to vector<8x2xf32>
    %cst_46 = arith.constant 0.000000e+00 : f32
    %181 = vector.broadcast %cst_46 : f32 to vector<8x2xf32>
    %182 = tpu.concatenate %179, %181 in 1 : vector<8x2xf32>, vector<8x2xf32> -> vector<8x4xf32>
    %183 = tpu.concatenate %181, %180 in 1 : vector<8x2xf32>, vector<8x2xf32> -> vector<8x4xf32>
    %184 = tpu.concatenate %182, %183 in 0 : vector<8x4xf32>, vector<8x4xf32> -> vector<16x4xf32>
    %cst_47 = arith.constant dense<0.000000e+00> : vector<8x4xf32>
    %185 = tpu.matmul %111, %184, %cst_47 {dimension_numbers = #tpu.dot_dimension_numbers<[1], [0], [0], [1], [0, 0, 1, 1], [], []>} : vector<8x16xf32>, vector<16x4xf32>, vector<8x4xf32> -> vector<8x4xf32>
    %186 = vector.broadcast %98 : vector<8x1xf32> to vector<8x2xf32>
    %187 = arith.mulf %186, %179 : vector<8x2xf32>
    %188 = vector.broadcast %110 : vector<8x1xf32> to vector<8x2xf32>
    %189 = arith.mulf %188, %180 : vector<8x2xf32>
    %190 = tpu.concatenate %187, %189 in 1 : vector<8x2xf32>, vector<8x2xf32> -> vector<8x4xf32>
    %191 = arith.addf %185, %190 : vector<8x4xf32>
    %192 = vector.broadcast %43 : vector<1x4xf32> to vector<8x4xf32>
    %193 = arith.addf %191, %192 : vector<8x4xf32>
    %cst_48 = arith.constant 0.000000e+00 : f32
    %194 = vector.broadcast %cst_48 : f32 to vector<8x4xf32>
    %195 = arith.maximumf %193, %194 : vector<8x4xf32>
    %cst_49 = arith.constant dense<0.000000e+00> : vector<8x40xf32>
    %196 = tpu.matmul %195, %14, %cst_49 {dimension_numbers = #tpu.dot_dimension_numbers<[1], [0], [0], [1], [0, 0, 1, 1], [], []>} : vector<8x4xf32>, vector<4x40xf32>, vector<8x40xf32> -> vector<8x40xf32>
    %197 = vector.broadcast %17 : vector<1x40xf32> to vector<8x40xf32>
    %198 = arith.addf %196, %197 : vector<8x40xf32>
    %cst_50 = arith.constant 0.000000e+00 : f32
    %199 = vector.broadcast %cst_50 : f32 to vector<8x40xf32>
    %200 = arith.maximumf %198, %199 : vector<8x40xf32>
    %cst_51 = arith.constant dense<0.000000e+00> : vector<8x40xf32>
    %201 = tpu.matmul %200, %15, %cst_51 {dimension_numbers = #tpu.dot_dimension_numbers<[1], [0], [0], [1], [0, 0, 1, 1], [], []>} : vector<8x40xf32>, vector<40x40xf32>, vector<8x40xf32> -> vector<8x40xf32>
    %202 = vector.broadcast %18 : vector<1x40xf32> to vector<8x40xf32>
    %203 = arith.addf %201, %202 : vector<8x40xf32>
    %cst_52 = arith.constant 0.000000e+00 : f32
    %204 = vector.broadcast %cst_52 : f32 to vector<8x40xf32>
    %205 = arith.maximumf %203, %204 : vector<8x40xf32>
    %cst_53 = arith.constant dense<0.000000e+00> : vector<8x2xf32>
    %206 = tpu.matmul %205, %16, %cst_53 {dimension_numbers = #tpu.dot_dimension_numbers<[1], [0], [0], [1], [0, 0, 1, 1], [], []>} : vector<8x40xf32>, vector<40x2xf32>, vector<8x2xf32> -> vector<8x2xf32>
    %207 = vector.broadcast %19 : vector<1x2xf32> to vector<8x2xf32>
    %208 = arith.addf %206, %207 : vector<8x2xf32>
    %cst_54 = arith.constant 0.000000e+00 : f32
    %209 = vector.broadcast %cst_54 : f32 to vector<8x2xf32>
    %210 = arith.maximumf %208, %209 : vector<8x2xf32>
    %211 = tpu.concatenate %210, %0 in 1 : vector<8x2xf32>, vector<8x5xf32> -> vector<8x7xf32>
    %cst_55 = arith.constant dense<0.000000e+00> : vector<8x70xf32>
    %212 = tpu.matmul %211, %20, %cst_55 {dimension_numbers = #tpu.dot_dimension_numbers<[1], [0], [0], [1], [0, 0, 1, 1], [], []>} : vector<8x7xf32>, vector<7x70xf32>, vector<8x70xf32> -> vector<8x70xf32>
    %213 = vector.broadcast %23 : vector<1x70xf32> to vector<8x70xf32>
    %214 = arith.addf %212, %213 : vector<8x70xf32>
    %cst_56 = arith.constant 0.000000e+00 : f32
    %215 = vector.broadcast %cst_56 : f32 to vector<8x70xf32>
    %216 = arith.maximumf %214, %215 : vector<8x70xf32>
    %cst_57 = arith.constant dense<0.000000e+00> : vector<8x70xf32>
    %217 = tpu.matmul %216, %21, %cst_57 {dimension_numbers = #tpu.dot_dimension_numbers<[1], [0], [0], [1], [0, 0, 1, 1], [], []>} : vector<8x70xf32>, vector<70x70xf32>, vector<8x70xf32> -> vector<8x70xf32>
    %218 = vector.broadcast %24 : vector<1x70xf32> to vector<8x70xf32>
    %219 = arith.addf %217, %218 : vector<8x70xf32>
    %cst_58 = arith.constant 0.000000e+00 : f32
    %220 = vector.broadcast %cst_58 : f32 to vector<8x70xf32>
    %221 = arith.maximumf %219, %220 : vector<8x70xf32>
    %cst_59 = arith.constant dense<0.000000e+00> : vector<8x1xf32>
    %222 = tpu.matmul %221, %22, %cst_59 {dimension_numbers = #tpu.dot_dimension_numbers<[1], [0], [0], [1], [0, 0, 1, 1], [], []>} : vector<8x70xf32>, vector<70x1xf32>, vector<8x1xf32> -> vector<8x1xf32>
    %223 = vector.broadcast %25 : vector<1x1xf32> to vector<8x1xf32>
    %224 = arith.addf %222, %223 : vector<8x1xf32>
    %225 = arith.negf %224 : vector<8x1xf32>
    %226 = math.exp %225 : vector<8x1xf32>
    %cst_60 = arith.constant 1.000000e+00 : f32
    %227 = vector.broadcast %cst_60 : f32 to vector<8x1xf32>
    %228 = arith.addf %227, %226 : vector<8x1xf32>
    %229 = arith.divf %227, %228 : vector<8x1xf32>
    %c0_61 = arith.constant 0 : index
    %c0_62 = arith.constant 0 : index
    %230 = vector.load %arg5[%c0_61, %c0_62] : memref<8x1xf32, #tpu.memory_space<vmem>>, vector<8x1xf32>
    tpu.vector_store %arg5[%c0_61, %c0_62], %229 {strides = array<i32>} : memref<8x1xf32, #tpu.memory_space<vmem>>, vector<8x1xf32>,
    return
  }
}

</mosaic_0001>

<bundles_post_ra>
// kernel: tpu_custom_call.1
= control target key start
LH: loop header
LB: loop body
LE: loop exit
PB: predicated region body
PF: predicated region fallthrough
CT: control target
= control target key end

     0   :  { %vm106_vm0 = vcmask 1044480   ;;  %vm102_vm1 = vcmask 39936   ;;  %vm162_vm2 = vcmask 1041408   ;;  %vm138_vm3 = vcmask 1042432   ;;  %s1114_s7 = smov 8   ;;  %s1115_s10 = smov 2   ;;  %s1529_s4 = inlined_call_operand.vmem [shape: f32[387,70], index: 4, kind: input, shape index: {}]   ;;  %s1530_s0 = inlined_call_operand.vmem [shape: f32[8,5], index: 0, kind: input, shape index: {}]   ;;  %s1531_s1 = inlined_call_operand.vmem [shape: f32[16,1], index: 1, kind: input, shape index: {}]   ;;  %s1532_s2 = inlined_call_operand.vmem [shape: bf16[16,8], index: 2, kind: input, shape index: {}]   ;;  %s1533_s3 = inlined_call_operand.vmem [shape: bf16[8,16], index: 3, kind: input, shape index: {}]   ;;  %s1534_s5 = inlined_call_operand.vmem [shape: f32[8,1], index: 5, kind: output, shape index: {}]  }
   0x1   :  { %v21_v0 = vld [vmem:[%s1529_s4] sm:$0xff]  ;;  %v1159_v2 = vld [vmem:[%s1529_s4 + $0x30] sm:$0xff]  ;;  %v26_v3 = vld [vmem:[%s1529_s4 + $0x28] sm:$0xff]  ;;  %vm194_vm4 = vcmask 1040384   ;;  %vm246_vm5 = vcmask 7168   ;;  %vm158_vm6 = vcmask 408576  }
   0x2   :  { %1034 = vmatpush.msk.msra.mxu2 %vm106_vm0, %v21_v0  ;;  %v1154_v1 = vld [vmem:[%s1530_s0] sm:$0xff]  ;;  %v150_v4 = vrot.slane %v1159_v2, 5  ;;  %v148_v5 = vrot.slane %v26_v3, 5  ;;  %v24_v7 = vld [vmem:[%s1529_s4 + $0x18] sm:$0xff]  ;;  %v23_v13 = vld [vmem:[%s1529_s4 + $0x10] sm:$0xff]  ;;  %v139_v16 = vrot.slane %v21_v0, 5 }
   0x3   :  { %1035 = vmatmul.msk.f32.vlgmr.msra.gmra.mxu2 %vm102_vm1, %v1154_v1  ;;  %v25_v6 = vld [vmem:[%s1529_s4 + $0x20] sm:$0xff]  ;;  %v144_v9 = vrot.slane %v24_v7, 5  ;;  %v142_v14 = vrot.slane %v23_v13, 5  ;;  %v22_v15 = vld [vmem:[%s1529_s4 + $0x8] sm:$0xff]  ;;  %v32_v26 = vld [vmem:[%s1529_s4 + $0x58] sm:$0xff]  ;;  %v195_v45 = vrot.slane %v1159_v2, 7 }
   0x4   :  { %v146_v8 = vrot.slane %v25_v6, 5  ;;  %1036 = vmatpush.msk.msra.mxu1 %vm162_vm2, %v150_v4  ;;  %v151_v10 = vsel %vm138_vm3, %v148_v5, %v150_v4  ;;  %v140_v18 = vrot.slane %v22_v15, 5  ;;  %v1188_v21 = vld [vmem:[%s1529_s4 + $0x68] sm:$0xff]  ;;  %v33_v24 = vld [vmem:[%s1529_s4 + $0x60] sm:$0xff]  ;;  %v204_v28 = vrot.slane %v32_v26, 7  ;;  %v31_v29 = vld [vmem:[%s1529_s4 + $0x50] sm:$0xff] }
   0x5   :  { %v145_v17 = vsel %vm138_vm3, %v142_v14, %v144_v9  ;;  %v245_v22 = vrot.slane %v1188_v21, 4  ;;  %v243_v23 = vld [vmem:[%s1531_s1 + $0x8] sm:$0xff]  ;;  %v208_v25 = vrot.slane %v1188_v21, 7  ;;  %v206_v27 = vrot.slane %v33_v24, 7  ;;  %v242_v41 = vld [vmem:[%s1531_s1] sm:$0xff]  ;;  %v28_v44 = vld [vmem:[%s1529_s4 + $0x38] sm:$0xff] }
   0x6   :  { %v149_v11 = vsel %vm138_vm3, %v146_v8, %v148_v5  ;;  %175 = vmatpush.msra.mxu1 %v151_v10  ;;  %v147_v12 = vsel %vm138_vm3, %v144_v9, %v146_v8  ;;  %v143_v19 = vsel %vm138_vm3, %v140_v18, %v142_v14  ;;  %v141_v20 = vsel %vm138_vm3, %v139_v16, %v140_v18  ;;  %v30_v30 = vld [vmem:[%s1529_s4 + $0x48] sm:$0xff]  ;;  %v29_v42 = vld [vmem:[%s1529_s4 + $0x40] sm:$0xff]  ;;  %v35_v50 = vld [vmem:[%s1529_s4 + $0x70] sm:$0xff] }
   0x7   :  { %1091 = vmatpush.msk.msra.mxu3 %vm194_vm4, %v245_v22  ;;  %v202_v31 = vrot.slane %v31_v29, 7  ;;  %v209_v32 = vsel %vm194_vm4, %v206_v27, %v208_v25  ;;  %v207_v33 = vsel %vm194_vm4, %v204_v28, %v206_v27  ;;  %v200_v34 = vrot.slane %v30_v30, 7  ;;  %v1241_v57 = vld [vmem:[%s1529_s4 + $0x80] sm:$0xff]  ;;  %v36_v3 = vld [vmem:[%s1529_s4 + $0x78] sm:$0xff] }
   0x8   :  { %176 = vmatpush.msra.mxu1 %v149_v11  ;;  %1042 = vmatmul.msk.f32.vlgmr.msra.gmra.mxu3 %vm246_vm5, %v243_v23  ;;  %v101_v37 = vperm.slane %v1188_v21, 1  ;;  %v198_v43 = vrot.slane %v29_v42, 7  ;;  %v196_v47 = vrot.slane %v28_v44, 7  ;;  %v283_v51 = vrot.slane %v35_v50, 5  ;;  %v1088_v27 = vld [vmem:[%s1532_s2] sm:$0xff]  }
   0x9   :  { %1038 = vmatpush.msk.msrb.mxu2 %vm162_vm2, %v209_v32  ;;  %v205_v35 = vsel %vm194_vm4, %v202_v31, %v204_v28  ;;  %v203_v36 = vsel %vm194_vm4, %v200_v34, %v202_v31  ;;  %v282_v52 = vrot.slane %v1188_v21, 5  ;;  %v131_v54 = vperm.slane %v1188_v21, 2 }
   0xa   :  { %177 = vmatpush.msra.mxu1 %v147_v12  ;;  %v201_v46 = vsel %vm194_vm4, %v198_v43, %v200_v34  ;;  %v199_v48 = vsel %vm194_vm4, %v196_v47, %v198_v43  ;;  %v197_v49 = vsel %vm194_vm4, %v195_v45, %v196_v47  ;;  %1043 = vmatpush.msk.msra.mxu0 %vm162_vm2, %v283_v51  ;;  %v244_v59 = vperm.slane %v1241_v57, 1  ;;  %v1264_v34 = vld [vmem:[%s1529_s4 + $0x170] sm:$0xff] }
   0xb   :  { %231 = vmatpush.msrb.mxu2 %v207_v33  ;;  %v284_v53 = vsel %vm138_vm3, %v282_v52, %v283_v51  ;;  %vm286_vm7 = vcmask 80896   ;;  %v323_v4 = vrot.slane %v35_v50, 7  ;;  %v324_v5 = vrot.slane %v36_v3, 7 }
   0xc   :  { %178 = vmatpush.msra.mxu1 %v145_v17  ;;  %310 = vmatpush.msra.mxu0 %v284_v53  ;;  %v326_v6 = vrot.slane %v1241_v57, 7  ;;  %v280_v9 = vperm.slane %v1241_v57, 2  ;;  %v1112_v16 = vmov 1   ;;  %v1113_v17 = vmov 0  }
   0xd   :  { %232 = vmatpush.msrb.mxu2 %v205_v35  ;;  %v325_v8 = vsel %vm194_vm4, %v323_v4, %v324_v5  ;;  %1097 = vset.pattern.permute.xlu0 %v1112_v16  ;;  %v1090_v28 = vunpack.c.h.bf16 %v1088_v27  ;;  %v1089_v29 = vunpack.c.l.bf16 %v1088_v27  ;;  %v71_v35 = vrot.slane %v1264_v34, 2 }
   0xe   :  { %179 = vmatpush.msra.mxu1 %v143_v19  ;;  %v327_v7 = vsel %vm194_vm4, %v324_v5, %v326_v6  ;;  %1098 = vset.pattern.permute.xlu1 %v1113_v17  ;;  %v320_v19 = vperm.slane %v1241_v57, 3  ;;  %vm398_vm8 = vcmask 64512   ;;  %v186_v43 = vperm.slane %v1188_v21, 3 }
   0xf   :  { %233 = vmatpush.msrb.mxu2 %v203_v36  ;;  %1046 = vmatpush.msk.msrb.mxu3 %vm162_vm2, %v327_v7  ;;  %vm401_vm9 = vcmask 130048   ;;  %vm75_vm10 = vcmask 15360  }
  0x10   :  { %180 = vmatpush.msra.mxu1 %v141_v20  ;;  %vm1283_vm11 = vmneg %vm75_vm10 }
  0x11   :  { %234 = vmatpush.msrb.mxu2 %v201_v46  ;;  %352 = vmatpush.msrb.mxu3 %v325_v8 }
  0x12   :  { %1040 = vmatpush.msk.msrb.mxu1 %vm194_vm4, %v245_v22  ;;  %vm555_vm4 = vcmask 1043456  }
  0x13   :  { %235 = vmatpush.msrb.mxu2 %v199_v48 }
  0x15   :  { %236 = vmatpush.msrb.mxu2 %v197_v49 }
  0x86   :  { %v127_v38 = vpop.f32.mrf.mxu2 }
  0x87   :  { %v128_v39 = vadd.f32 %v127_v38, %v101_v37 }
  0x89   :  { %v130_v40 = vmax.f32 %v128_v39, 0.0  ;;  %v366_v39 = vld [vmem:[%s1533_s3] sm:$0xf]  ;;  %s1116_s3 = smov 120  }
  0x8a   :  { %v367_v46 = vunpack.c.l.bf16 %v366_v39 }
  0x8b   :  { %1037 = vmatmul.msk.f32.vlgmr.msra.gmra.mxu1 %vm158_vm6, %v130_v40  ;;  %v275_v62 = vpop.f32.mrf.mxu3 }
  0x8c   :  { %v276_v0 = vadd.f32 %v275_v62, %v244_v59 }
  0x8e   :  { %v279_v2 = vmax.f32 %v276_v0, 0.0 }
  0x93   :  { %1041 = vmatmul.msk.f32.vlgmr.msrb.gmra.mxu1 %vm246_vm5, %v242_v41 }
 0x108   :  { %v182_v55 = vpop.f32.mrf.mxu1 }
 0x109   :  { %v183_v56 = vadd.f32 %v182_v55, %v131_v54 }
 0x10b   :  { %v185_v58 = vmax.f32 %v183_v56, 0.0 }
 0x10d   :  { %1039 = vmatmul.msk.f32.vlgmr.msrb.gmra.mxu2 %vm158_vm6, %v185_v58  ;;  %vm551_vm6 = vcmask 31744  }
 0x110   :  { %v272_v60 = vpop.f32.mrf.mxu1 }
 0x111   :  { %v273_v61 = vadd.f32 %v272_v60, %v244_v59 }
 0x113   :  { %v278_v63 = vmax.f32 %v273_v61, 0.0 }
 0x115   :  { %1044 = vmatmul.msk.f32.vlgmr.msra.gmra.mxu0 %vm286_vm7, %v278_v63  ;;  %v1294_v63 = vld [vmem:[%s1529_s4 + $0x178] sm:$0xff] }
 0x116   :  { %v78_v0 = vrot.slane %v1294_v63, 1 }
 0x11d   :  { %1045 = vmatmul.msk.f32.gmra.mxu0 %vm286_vm7, %v279_v2 }
 0x190   :  { %v238_v47 = vpop.f32.mrf.mxu2 }
 0x191   :  { %v239_v49 = vadd.f32 %v238_v47, %v186_v43  ;;  %v1342_v47 = vld [vmem:[%s1529_s4 + $0xd0] sm:$0xff] }
 0x192   :  { %v312_v10 = vpop.f32.mrf.mxu0  ;;  %620 = vmatpush.msra.mxu3 %v1342_v47 }
 0x193   :  { %v313_v11 = vadd.f32 %v312_v10, %v280_v9  ;;  %v241_v21 = vmax.f32 %v239_v49, 0.0  ;;  %v441_v10 = vlaneseq  ;;  %v1356_v49 = vld [vmem:[%s1529_s4 + $0xd8] sm:$0xff] }
 0x195   :  { %v318_v12 = vmax.f32 %v313_v11, 0.0 }
 0x197   :  { %1047 = vmatmul.msk.f32.vlgmr.msrb.gmra.mxu3 %vm286_vm7, %v318_v12 }
 0x19a   :  { %v315_v13 = vpop.f32.mrf.mxu0 }
 0x19b   :  { %v316_v14 = vadd.f32 %v315_v13, %v280_v9 }
 0x19d   :  { %v319_v15 = vmax.f32 %v316_v14, 0.0  ;;  %v442_v14 = vand.u32 127, %v441_v10 }
 0x19f   :  { %1048 = vmatmul.msk.f32.gmra.mxu3 %vm286_vm7, %v319_v15  ;;  %v479_v17 = vadd.s32 4294967288, %v442_v14  ;;  %vm580_vm7 = vcmask 326656  }
 0x21a   :  { %v354_v18 = vpop.f32.mrf.mxu3 }
 0x21b   :  { %v355_v24 = vadd.f32 %v354_v18, %v320_v19 }
 0x21d   :  { %v360_v25 = vmax.f32 %v355_v24, 0.0 }
 0x222   :  { %v357_v20 = vpop.f32.mrf.mxu3 }
 0x223   :  { %v358_v22 = vadd.f32 %v357_v20, %v320_v19 }
 0x225   :  { %v361_v23 = vmax.f32 %v358_v22, 0.0 }
 0x227   :  { %375 = vperm.xlu1 %1098, %v361_v23   ;;  %385 = vperm.xlu0 %1097, %v361_v23  }
 0x22f   :  { %370 = vperm.xlu1 %1098, %v360_v25   ;;  %381 = vperm.xlu0 %1097, %v360_v25  }
 0x299   :  { %v386_v26 = vpop.permute.xlu0 %385  ;;  %v376_v36 = vpop.permute.xlu1 %375 }
 0x29a   :  { %v389_v31 = vmul.f32 %v1090_v28, %v386_v26  ;;  %v379_v40 = vmul.f32 %v1090_v28, %v376_v36  ;;  %v1304_v28 = vrot.slane %v1241_v57, 4 }
 0x2a1   :  { %v382_v30 = vpop.permute.xlu0 %381  ;;  %v371_v37 = vpop.permute.xlu1 %370 }
 0x2a2   :  { %v388_v32 = vmul.f32 %v1089_v29, %v382_v30  ;;  %v378_v44 = vmul.f32 %v1089_v29, %v371_v37  ;;  %v1311_v29 = vld [vmem:[%s1529_s4 + $0xa8] sm:$0xff]  ;;  %v1316_v30 = vld [vmem:[%s1529_s4 + $0xa0] sm:$0xff] }
 0x2a4   :  { %v1099_v33 = vpack.i.bf16 %v388_v32, %v389_v31 }
 0x2a6   :  { %1100 = vrot.lane.b32.xlu2 %v1099_v33, %s1114_s7 }
 0x2ae   :  { %72 = vrot.lane.b32.xlu2 %v71_v35, %s1115_s10 }
 0x300   :  { %v1101_v38 = vpop.permute.xlu2 %1100 }
 0x301   :  { %v1103_v41 = vunpack.i.h.bf16 %v1101_v38  ;;  %v1102_v42 = vunpack.i.l.bf16 %v1101_v38 }
 0x303   :  { %v400_v45 = vsel %vm398_vm8, %v379_v40, %v1102_v42  ;;  %v399_v48 = vsel %vm398_vm8, %v378_v44, %v1103_v41  ;;  %v40_v44 = vld [vmem:[%s1529_s4 + $0x98] sm:$0xff] }
 0x304   :  { %419 = vmatpush.msra.mxu1 %v400_v45  ;;  %v39_v45 = vld [vmem:[%s1529_s4 + $0x90] sm:$0xff] }
 0x306   :  { %420 = vmatpush.msra.mxu1 %v399_v48  ;;  %v1347_v48 = vld [vmem:[%s1529_s4 + $0xc8] sm:$0xff] }
 0x307   :  { %1049 = vmatmul.msk.f32.vlgmr.msra.gmra.mxu1 %vm401_vm9, %v367_v46  ;;  %v38_v46 = vld [vmem:[%s1529_s4 + $0x88] sm:$0xff]  ;;  %621 = vmatpush.msra.mxu3 %v1347_v48 }
 0x308   :  { %v73_v50 = vpop.permute.xlu2 %72  ;;  %1056 = vmatpush.msk.msrb.mxu1 %vm555_vm4, %v1304_v28 }
 0x309   :  { %v76_v51 = vsel %vm75_vm10, %v1264_v34, %v73_v50  ;;  %v1359_v50 = vperm.slane %v1356_v49, 0 }
 0x30a   :  { %v492_v52 = vrot.slane %v76_v51, 1 }
 0x30c   :  { %1050 = vmatpush.msk.msra.mxu2 %vm162_vm2, %v492_v52 }
 0x30d   :  { %1051 = vmatmul.msk.f32.vlgmr.msra.gmra.mxu2 %vm75_vm10, %v241_v21 }
 0x30e   :  { %595 = vmatpush.msrb.mxu2 %v1311_v29 }
 0x310   :  { %596 = vmatpush.msrb.mxu2 %v1316_v30 }
 0x312   :  { %597 = vmatpush.msrb.mxu2 %v40_v44 }
 0x314   :  { %598 = vmatpush.msrb.mxu2 %v39_v45 }
 0x316   :  { %599 = vmatpush.msrb.mxu2 %v38_v46 }
 0x318   :  { %1066 = vmatpush.msk.msra.mxu2 %vm555_vm4, %v1304_v28 }
 0x384   :  { %v422_v53 = vpop.f32.mrf.mxu1 }
 0x385   :  { %460 = vrot.lane.b32.xlu0 %v422_v53, %s1116_s3  ;;  %v425_v54 = vsel %vm398_vm8, %v422_v53, 0.0 }
 0x386   :  { %426 = vadd.xlane.f32.xlu1 %v425_v54  ;;  %v1372_v54 = vld [vmem:[%s1529_s4 + $0xb8] sm:$0xff] }
 0x38d   :  { %79 = vrot.lane.b32.xlu0 %v78_v0, %s1115_s10 }
 0x390   :  { %v515_v56 = vpop.f32.mrf.mxu2 }
 0x391   :  { %1053 = vmatpush.msk.msrb.mxu0 %vm1283_vm11, %v515_v56 }
 0x393   :  { %1054 = vmatpush.msk.msrb.mxu0 %vm75_vm10, %v515_v56 }
 0x3f7   :  { %v461_v58 = vpop.permute.xlu0 %460 }
 0x3f8   :  { %v463_v59 = vsel %vm398_vm8, %v461_v58, 0.0  ;;  %v84_v58 = vrot.slane %v1294_v63, 2 }
 0x3f9   :  { %464 = vadd.xlane.f32.xlu2 %v463_v59  ;;  %v427_v60 = vpop.xlane.xlu1 %426 }
 0x3fa   :  { %v428_v61 = vadd.f32 1.0, %v427_v60  ;;  %v1392_v60 = vperm.slane %v1356_v49, 1 }
 0x3fc   :  { %1104 = vrsqrt.f32 %v428_v61  ;;  %vm435_vm13 = vweird.f32 %v428_v61 }
 0x3ff   :  { %v80_v31 = vpop.permute.xlu0 %79 }
 0x400   :  { %v82_v33 = vsel %vm75_vm10, %v1294_v63, %v80_v31 }
 0x401   :  { %v546_v38 = vperm.slane %v82_v33, 5 }
 0x402   :  { %v1105_v62 = vpop.eup %1104 }
 0x403   :  { %v430_v2 = vmul.f32 %v1105_v62, %v428_v61  ;;  %vm436_vm12 = vweird.f32 %v1105_v62 }
 0x404   :  { %vm437_vm14 = vmor %vm435_vm13, %vm436_vm12 }
 0x405   :  { %v431_v3 = vmul.f32 %v1105_v62, %v430_v2 }
 0x407   :  { %v432_v6 = vmul.f32 0.5, %v431_v3 }
 0x409   :  { %v433_v7 = vsub.f32 1.5, %v432_v6 }
 0x40b   :  { %v434_v11 = vmul.f32 %v1105_v62, %v433_v7 }
 0x40d   :  { %v438_v15 = vsel %vm437_vm14, %v1105_v62, %v434_v11 }
 0x40e   :  { %v439_v19 = vmul.f32 %v438_v15, %v422_v53  ;;  %v443_v20 = vperm.slane %v438_v15, %v442_v14  ;;  %v1322_v32 = vmul.f32 %v438_v15, %v438_v15 }
 0x410   :  { %v457_v25 = vmul.f32 %v443_v20, %v439_v19  ;;  %v520_v37 = vmul.f32 %v515_v56, %v1322_v32 }
 0x46c   :  { %v465_v4 = vpop.xlane.xlu2 %464 }
 0x46d   :  { %v466_v5 = vadd.f32 1.0, %v465_v4  ;;  %v1404_v4 = vperm.slane %v1356_v49, 2 }
 0x46f   :  { %1106 = vrsqrt.f32 %v466_v5  ;;  %vm473_vm1 = vweird.f32 %v466_v5 }
 0x475   :  { %v1107_v8 = vpop.eup %1106 }
 0x476   :  { %v468_v9 = vmul.f32 %v1107_v8, %v466_v5  ;;  %vm474_vm15 = vweird.f32 %v1107_v8 }
 0x477   :  { %vm475_vm3 = vmor %vm473_vm1, %vm474_vm15 }
 0x478   :  { %v469_v12 = vmul.f32 %v1107_v8, %v468_v9 }
 0x47a   :  { %v470_v13 = vmul.f32 0.5, %v469_v12 }
 0x47c   :  { %v471_v16 = vsub.f32 1.5, %v470_v13 }
 0x47e   :  { %v472_v18 = vmul.f32 %v1107_v8, %v471_v16 }
 0x480   :  { %v476_v22 = vsel %vm475_vm3, %v1107_v8, %v472_v18  ;;  %v69_v8 = vld [vmem:[%s1529_s4 + $0x180] sm:$0x7] }
 0x481   :  { %v477_v23 = vmul.f32 %v476_v22, %v422_v53  ;;  %v480_v24 = vperm.slane %v476_v22, %v479_v17  ;;  %v1320_v57 = vmul.f32 %v476_v22, %v476_v22  ;;  %v1366_v53 = vld [vmem:[%s1529_s4 + $0xc0] sm:$0xff]  ;;  %v91_v9 = vrot.slane %v69_v8, 1 }
 0x482   :  { %622 = vmatpush.msra.mxu3 %v1366_v53 }
 0x483   :  { %v488_v26 = vmul.f32 %v480_v24, %v477_v23  ;;  %v521_v36 = vmul.f32 %v515_v56, %v1320_v57  ;;  %v1378_v56 = vld [vmem:[%s1529_s4 + $0xb0] sm:$0xff] }
 0x484   :  { %623 = vmatpush.msra.mxu3 %v1372_v54 }
 0x485   :  { %v1299_v27 = vsel %vm398_vm8, %v457_v25, %v488_v26  ;;  %v522_v39 = vsel %vm75_vm10, %v520_v37, %v521_v36  ;;  %vm83_vm8 = vcmask 1045504  }
 0x486   :  { %1055 = vmatmul.msk.f32.vlgmr.msrb.gmra.mxu0 %vm401_vm9, %v1299_v27  ;;  %624 = vmatpush.msra.mxu3 %v1378_v56  ;;  %v85_v59 = vsel %vm83_vm8, %v71_v35, %v84_v58 }
 0x487   :  { %86 = vrot.lane.b32.xlu0 %v85_v59, %s1115_s10  ;;  %v54_v59 = vld [vmem:[%s1529_s4 + $0x108] sm:$0xff] }
 0x488   :  { %747 = vmatpush.msrb.mxu3 %v1342_v47 }
 0x48a   :  { %748 = vmatpush.msrb.mxu3 %v1347_v48 }
 0x48c   :  { %749 = vmatpush.msrb.mxu3 %v1366_v53 }
 0x48e   :  { %750 = vmatpush.msrb.mxu3 %v1372_v54 }
 0x48f   :  { %92 = vrot.lane.b32.xlu0 %v91_v9, %s1115_s10 }
 0x490   :  { %751 = vmatpush.msrb.mxu3 %v1378_v56 }
 0x497   :  { %96 = vrot.lane.b32.xlu0 %v84_v58, %s1115_s10 }
 0x49f   :  { %884 = vrot.lane.b32.xlu0 %v1154_v1, %s1115_s10 }
 0x4f9   :  { %v87_v35 = vpop.permute.xlu0 %86 }
 0x4fa   :  { %v89_v2 = vsel %vm75_vm10, %v1264_v34, %v87_v35  ;;  %v52_v35 = vld [vmem:[%s1529_s4 + $0xf8] sm:$0xff] }
 0x4fb   :  { %v631_v3 = vrot.slane %v89_v2, 5 }
 0x4fd   :  { %1060 = vmatpush.msk.msra.mxu0 %vm162_vm2, %v631_v3 }
 0x4ff   :  { %723 = vmatpush.msrb.mxu0 %v1311_v29 }
 0x501   :  { %724 = vmatpush.msrb.mxu0 %v1316_v30  ;;  %v93_v11 = vpop.permute.xlu0 %92 }
 0x502   :  { %v95_v14 = vsel %vm75_vm10, %v1294_v63, %v93_v11 }
 0x503   :  { %v543_v40 = vpop.f32.mrf.mxu0  ;;  %725 = vmatpush.msrb.mxu0 %v40_v44  ;;  %v682_v15 = vperm.slane %v95_v14, 7  ;;  %v51_v14 = vld [vmem:[%s1529_s4 + $0xf0] sm:$0xff] }
 0x504   :  { %v544_v41 = vadd.f32 %v543_v40, %v522_v39  ;;  %v100_v39 = vsel %vm75_vm10, %v69_v8, %v93_v11 }
 0x505   :  { %726 = vmatpush.msrb.mxu0 %v39_v45 }
 0x506   :  { %v547_v42 = vadd.f32 %v546_v38, %v544_v41 }
 0x507   :  { %727 = vmatpush.msrb.mxu0 %v38_v46 }
 0x508   :  { %v548_v43 = vmax.f32 %v547_v42, 0.0  ;;  %v809_v42 = vperm.slane %v100_v39, 1 }
 0x509   :  { %v97_v24 = vpop.permute.xlu0 %96 }
 0x50a   :  { %1057 = vmatmul.msk.f32.vlgmr.msrb.gmra.mxu1 %vm551_vm6, %v548_v43  ;;  %v99_v25 = vsel %vm75_vm10, %v1294_v63, %v97_v24  ;;  %v62_v24 = vld [vmem:[%s1529_s4 + $0x148] sm:$0xff] }
 0x50b   :  { %v758_v26 = vrot.slane %v99_v25, 1  ;;  %v61_v25 = vld [vmem:[%s1529_s4 + $0x140] sm:$0xff] }
 0x511   :  { %v885_v11 = vpop.permute.xlu0 %884 }
 0x587   :  { %v575_v51 = vpop.f32.mrf.mxu1 }
 0x588   :  { %v576_v52 = vadd.f32 %v575_v51, %v1359_v50  ;;  %v891_v51 = vrot.slane %v1356_v49, 3 }
 0x58a   :  { %v578_v21 = vmax.f32 %v576_v52, 0.0 }
 0x58c   :  { %1058 = vmatmul.msk.f32.vlgmr.msrb.gmra.mxu2 %vm580_vm7, %v578_v21 }
 0x60f   :  { %v601_v61 = vpop.f32.mrf.mxu2 }
 0x610   :  { %v602_v62 = vadd.f32 %v601_v61, %v1392_v60  ;;  %v940_v61 = vrot.slane %v54_v59, 2 }
 0x612   :  { %v604_v0 = vmax.f32 %v602_v62, 0.0  ;;  %v66_v62 = vld [vmem:[%s1529_s4 + $0x168] sm:$0xff] }
 0x614   :  { %1059 = vmatmul.msk.f32.vlgmr.msra.gmra.mxu3 %vm580_vm7, %v604_v0 }
 0x615   :  { %850 = vmatpush.msra.mxu3 %v1311_v29 }
 0x617   :  { %851 = vmatpush.msra.mxu3 %v1316_v30 }
 0x619   :  { %852 = vmatpush.msra.mxu3 %v40_v44 }
 0x61b   :  { %853 = vmatpush.msra.mxu3 %v39_v45 }
 0x61d   :  { %854 = vmatpush.msra.mxu3 %v38_v46 }
 0x697   :  { %v626_v5 = vpop.f32.mrf.mxu3 }
 0x698   :  { %v627_v6 = vadd.f32 %v626_v5, %v1404_v4 }
 0x69a   :  { %v629_v7 = vmax.f32 %v627_v6, 0.0  ;;  %v936_v6 = vrot.slane %v52_v35, 2 }
 0x69c   :  { %1061 = vmatmul.msk.f32.vlgmr.msra.gmra.mxu0 %vm75_vm10, %v629_v7 }
 0x69d   :  { %1076 = vmatpush.msk.msra.mxu0 %vm555_vm4, %v1304_v28 }
 0x719   :  { %v654_v10 = vpop.f32.mrf.mxu0 }
 0x71a   :  { %1063 = vmatpush.msk.msra.mxu1 %vm1283_vm11, %v654_v10  ;;  %v659_v12 = vmul.f32 %v654_v10, %v1322_v32  ;;  %v660_v13 = vmul.f32 %v654_v10, %v1320_v57 }
 0x71c   :  { %1064 = vmatpush.msk.msra.mxu1 %vm75_vm10, %v654_v10  ;;  %v661_v1 = vsel %vm75_vm10, %v659_v12, %v660_v13 }
 0x71d   :  { %1065 = vmatmul.msk.f32.vlgmr.msra.gmra.mxu1 %vm401_vm9, %v1299_v27 }
 0x71e   :  { %1070 = vmatpush.msk.msrb.mxu1 %vm162_vm2, %v758_v26  ;;  %vm898_vm2 = vcmask 1046528   ;;  %v888_v26 = vperm.slane %v66_v62, 6 }
 0x720   :  { %874 = vmatpush.msra.mxu1 %v1342_v47 }
 0x722   :  { %875 = vmatpush.msra.mxu1 %v1347_v48  ;;  %v49_v48 = vld [vmem:[%s1529_s4 + $0xe0] sm:$0xff] }
 0x723   :  { %v892_v52 = vrot.slane %v49_v48, 3 }
 0x724   :  { %876 = vmatpush.msra.mxu1 %v1366_v53  ;;  %v56_v53 = vld [vmem:[%s1529_s4 + $0x118] sm:$0xff] }
 0x725   :  { %v893_v21 = vsel %vm106_vm0, %v891_v51, %v892_v52  ;;  %v944_v58 = vrot.slane %v56_v53, 2  ;;  %vm894_vm0 = vcmask 56320  }
 0x726   :  { %877 = vmatpush.msra.mxu1 %v1372_v54  ;;  %v55_v54 = vld [vmem:[%s1529_s4 + $0x110] sm:$0xff] }
 0x727   :  { %v942_v49 = vrot.slane %v55_v54, 2 }
 0x728   :  { %878 = vmatpush.msra.mxu1 %v1378_v56 }
 0x729   :  { %v945_v2 = vsel %vm83_vm8, %v942_v49, %v944_v58  ;;  %v943_v5 = vsel %vm83_vm8, %v940_v61, %v942_v49 }
 0x79a   :  { %v679_v16 = vpop.f32.mrf.mxu1 }
 0x79b   :  { %v680_v17 = vadd.f32 %v679_v16, %v661_v1  ;;  %v50_v1 = vld [vmem:[%s1529_s4 + $0xe8] sm:$0xff] }
 0x79d   :  { %v683_v18 = vadd.f32 %v682_v15, %v680_v17  ;;  %v934_v15 = vrot.slane %v51_v14, 2  ;;  %v932_v17 = vrot.slane %v50_v1, 2 }
 0x79f   :  { %v684_v19 = vmax.f32 %v683_v18, 0.0  ;;  %v937_v16 = vsel %vm83_vm8, %v934_v15, %v936_v6  ;;  %v931_v18 = vrot.slane %v49_v48, 2 }
 0x7a1   :  { %1067 = vmatmul.msk.f32.vlgmr.msra.gmra.mxu2 %vm551_vm6, %v684_v19  ;;  %v933_v19 = vsel %vm83_vm8, %v931_v18, %v932_v17 }
 0x824   :  { %v705_v20 = vpop.f32.mrf.mxu2 }
 0x825   :  { %v706_v22 = vadd.f32 %v705_v20, %v1359_v50  ;;  %v65_v20 = vld [vmem:[%s1529_s4 + $0x160] sm:$0xff] }
 0x827   :  { %v708_v23 = vmax.f32 %v706_v22, 0.0  ;;  %v64_v22 = vld [vmem:[%s1529_s4 + $0x158] sm:$0xff] }
 0x829   :  { %1068 = vmatmul.msk.f32.vlgmr.msrb.gmra.mxu0 %vm580_vm7, %v708_v23  ;;  %v63_v23 = vld [vmem:[%s1529_s4 + $0x150] sm:$0xff] }
 0x8a6   :  { %v729_v28 = vpop.f32.mrf.mxu0 }
 0x8a7   :  { %v730_v29 = vadd.f32 %v729_v28, %v1392_v60 }
 0x8a9   :  { %v732_v30 = vmax.f32 %v730_v29, 0.0 }
 0x8ab   :  { %1069 = vmatmul.msk.f32.vlgmr.msrb.gmra.mxu3 %vm580_vm7, %v732_v30 }
 0x8ac   :  { %1084 = vmatpush.msk.msrb.mxu3 %vm83_vm8, %v66_v62 }
 0x8ae   :  { %998 = vmatpush.msrb.mxu3 %v65_v20 }
 0x8b0   :  { %999 = vmatpush.msrb.mxu3 %v64_v22 }
 0x8b2   :  { %1000 = vmatpush.msrb.mxu3 %v63_v23 }
 0x8b4   :  { %1001 = vmatpush.msrb.mxu3 %v62_v24 }
 0x8b6   :  { %1002 = vmatpush.msrb.mxu3 %v61_v25 }
 0x92e   :  { %v753_v63 = vpop.f32.mrf.mxu3 }
 0x92f   :  { %v754_v31 = vadd.f32 %v753_v63, %v1404_v4  ;;  %v60_v63 = vld [vmem:[%s1529_s4 + $0x138] sm:$0xff] }
 0x930   :  { %1003 = vmatpush.msrb.mxu3 %v60_v63 }
 0x931   :  { %v756_v33 = vmax.f32 %v754_v31, 0.0  ;;  %v59_v31 = vld [vmem:[%s1529_s4 + $0x130] sm:$0xff] }
 0x932   :  { %1004 = vmatpush.msrb.mxu3 %v59_v31 }
 0x933   :  { %1071 = vmatmul.msk.f32.vlgmr.msrb.gmra.mxu1 %vm75_vm10, %v756_v33  ;;  %v58_v33 = vld [vmem:[%s1529_s4 + $0x128] sm:$0xff] }
 0x934   :  { %1005 = vmatpush.msrb.mxu3 %v58_v33 }
 0x9b0   :  { %v781_v36 = vpop.f32.mrf.mxu1 }
 0x9b1   :  { %1073 = vmatpush.msk.msrb.mxu2 %vm1283_vm11, %v781_v36  ;;  %v786_v37 = vmul.f32 %v781_v36, %v1322_v32  ;;  %v787_v38 = vmul.f32 %v781_v36, %v1320_v57 }
 0x9b3   :  { %1074 = vmatpush.msk.msrb.mxu2 %vm75_vm10, %v781_v36  ;;  %v788_v40 = vsel %vm75_vm10, %v786_v37, %v787_v38  ;;  %v922_v36 = vperm.slane %v66_v62, 7 }
 0x9b4   :  { %1075 = vmatmul.msk.f32.vlgmr.msrb.gmra.mxu2 %vm401_vm9, %v1299_v27  ;;  %vm956_vm9 = vcmask 572416  }
 0x9b5   :  { %1080 = vmatpush.msk.msra.mxu2 %vm898_vm2, %v893_v21 }
 0xa37   :  { %v806_v41 = vpop.f32.mrf.mxu2 }
 0xa38   :  { %v807_v43 = vadd.f32 %v806_v41, %v788_v40  ;;  %v983_v40 = vperm.slane %v1264_v34, 0 }
 0xa3a   :  { %v810_v44 = vadd.f32 %v809_v42, %v807_v43 }
 0xa3c   :  { %v811_v45 = vmax.f32 %v810_v44, 0.0 }
 0xa3e   :  { %1077 = vmatmul.msk.f32.vlgmr.msra.gmra.mxu0 %vm551_vm6, %v811_v45 }
 0xabb   :  { %v832_v55 = vpop.f32.mrf.mxu0 }
 0xabc   :  { %v833_v46 = vadd.f32 %v832_v55, %v1359_v50  ;;  %v57_v50 = vld [vmem:[%s1529_s4 + $0x120] sm:$0xff] }
 0xabd   :  { %v946_v56 = vrot.slane %v57_v50, 2 }
 0xabe   :  { %v835_v47 = vmax.f32 %v833_v46, 0.0 }
 0xabf   :  { %1082 = vmatpush.msk.msrb.mxu0 %vm83_vm8, %v946_v56  ;;  %v947_v0 = vsel %vm83_vm8, %v944_v58, %v946_v56 }
 0xac0   :  { %1078 = vmatmul.msk.f32.vlgmr.msra.gmra.mxu3 %vm580_vm7, %v835_v47 }
 0xac1   :  { %970 = vmatpush.msrb.mxu0 %v947_v0 }
 0xac3   :  { %971 = vmatpush.msrb.mxu0 %v945_v2 }
 0xac5   :  { %972 = vmatpush.msrb.mxu0 %v943_v5 }
 0xb43   :  { %v856_v27 = vpop.f32.mrf.mxu3 }
 0xb44   :  { %v857_v57 = vadd.f32 %v856_v27, %v1392_v60  ;;  %v53_v60 = vld [vmem:[%s1529_s4 + $0x100] sm:$0xff] }
 0xb45   :  { %v938_v3 = vrot.slane %v53_v60, 2 }
 0xb46   :  { %v859_v32 = vmax.f32 %v857_v57, 0.0 }
 0xb47   :  { %v941_v7 = vsel %vm83_vm8, %v938_v3, %v940_v61  ;;  %v939_v8 = vsel %vm83_vm8, %v936_v6, %v938_v3 }
 0xb48   :  { %1079 = vmatmul.msk.f32.vlgmr.msra.gmra.mxu1 %vm580_vm7, %v859_v32  ;;  %973 = vmatpush.msrb.mxu0 %v941_v7 }
 0xb4a   :  { %974 = vmatpush.msrb.mxu0 %v939_v8 }
 0xb4c   :  { %975 = vmatpush.msrb.mxu0 %v937_v16 }
 0xbc5   :  { %v880_v9 = vpop.f32.mrf.mxu1 }
 0xbc6   :  { %v881_v10 = vadd.f32 %v880_v9, %v1404_v4  ;;  %v935_v4 = vsel %vm83_vm8, %v932_v17, %v934_v15 }
 0xbc7   :  { %976 = vmatpush.msrb.mxu0 %v935_v4 }
 0xbc8   :  { %v883_v12 = vmax.f32 %v881_v10, 0.0 }
 0xbc9   :  { %977 = vmatpush.msrb.mxu0 %v933_v19 }
 0xbca   :  { %v887_v13 = vsel %vm75_vm10, %v883_v12, %v885_v11 }
 0xbcb   :  { %1081 = vmatmul.msk.f32.vlgmr.msra.gmra.mxu2 %vm894_vm0, %v887_v13 }
 0xc4e   :  { %v918_v28 = vpop.f32.mrf.mxu2 }
 0xc4f   :  { %v919_v29 = vadd.f32 %v918_v28, %v888_v26 }
 0xc51   :  { %v921_v30 = vmax.f32 %v919_v29, 0.0 }
 0xc53   :  { %1083 = vmatmul.msk.f32.vlgmr.msrb.gmra.mxu0 %vm956_vm9, %v921_v30 }
 0xcd0   :  { %v979_v37 = vpop.f32.mrf.mxu0 }
 0xcd1   :  { %v980_v38 = vadd.f32 %v979_v37, %v922_v36 }
 0xcd3   :  { %v982_v39 = vmax.f32 %v980_v38, 0.0 }
 0xcd5   :  { %1085 = vmatmul.msk.f32.vlgmr.msrb.gmra.mxu3 %vm956_vm9, %v982_v39 }
 0xd58   :  { %v1007_v41 = vpop.f32.mrf.mxu3 }
 0xd59   :  { %v1008_v42 = vadd.f32 %v1007_v41, %v983_v40 }
 0xd5b   :  { %v1086_v43 = vmul.f32 -1.442695, %v1008_v42 }
 0xd5d   :  { %1108 = vpow2.f32 %v1086_v43 }
 0xd63   :  { %v1109_v44 = vpop.eup %1108 }
 0xd64   :  { %v1013_v45 = vadd.f32 1.0, %v1109_v44 }
 0xd66   :  { %1110 = vrcp.f32 %v1013_v45  ;;  %v1025_v27 = vand.u32 2147483648, %v1013_v45  ;;  %v1023_v32 = vand.u32 2147483647, %v1013_v45  ;;  %vm1019_vm11 = vweird.f32 %v1013_v45 }
 0xd68   :  { %v1026_v51 = vor.u32 1.1754944e-38, %v1025_v27  ;;  %vm1024_vm13 = vcmp.eq.f32.partialorder %v1023_v32, 8.507059e+37 }
 0xd6c   :  { %v1111_v55 = vpop.eup %1110 }
 0xd6d   :  { %v1015_v46 = vmul.f32 %v1111_v55, %v1013_v45  ;;  %vm1020_vm10 = vweird.f32 %v1111_v55 }
 0xd6e   :  { %vm1021_vm12 = vmor %vm1019_vm11, %vm1020_vm10 }
 0xd6f   :  { %v1016_v47 = vsub.f32 1.0, %v1015_v46 }
 0xd71   :  { %v1017_v57 = vmul.f32 %v1111_v55, %v1016_v47 }
 0xd73   :  { %v1018_v48 = vadd.f32 %v1111_v55, %v1017_v57 }
 0xd75   :  { %v1022_v52 = vsel %vm1021_vm12, %v1111_v55, %v1018_v48 }
 0xd76   :  { %v1027_v34 = vsel %vm1024_vm13, %v1026_v51, %v1022_v52 }
 0xd77   :  { %1029 = vst.msk [vmem:[%s1534_s5] sm:$0xff] %vm246_vm5, %v1027_v34 }

</bundles_post_ra>
